<compile_context>
chip_gen: v7x
topology: tpu7x:2x2x1
jax: 0.10.0
libtpu: 0.0.40
codegen_flags: <defaults>
</compile_context>

<pallas_src>
import functools
import math

import jax
import jax.numpy as jnp
from jax import lax
from jax.experimental import pallas as pl
from jax.experimental.pallas import tpu as pltpu

_MIB = 1024 * 1024


def _round_up(x, m):
    return ((x + m - 1) // m) * m


def _tpu_budget():
    """Best-effort (vmem_capacity_bytes, tensorcores_per_chip)."""
    vmem_cap = 64 * _MIB   # conservative default: v7x per-TC VMEM
    num_cores = 2          # conservative default: assume megacore sharding helps
    try:
        info = pltpu.get_tpu_info()
        vmem_cap = int(info.vmem_capacity_bytes)
        # v7x exposes 64 MiB per TensorCore and has 2 TCs/chip; v5e/v6e have
        # 128 MiB and a single TC.
        num_cores = 2 if vmem_cap <= 64 * _MIB else 1
        vmem_cap = max(32 * _MIB, min(vmem_cap, 128 * _MIB))
    except Exception:
        pass
    return vmem_cap, num_cores


def _npn_linear_lite_kernel(x_ref, w_ref, b_ref, o_ref, acc_ref, *, kslab, nslabs):
    k = pl.program_id(1)

    @pl.when(k == 0)
    def _init():
        acc_ref[...] = jnp.zeros_like(acc_ref)

    def slab_body(i, carry):
        start = pl.multiple_of(i * kslab, kslab)
        # (kslab, TN) slab of W; upcast (no-op for f32 weights) then square,
        # so the w*w temporary is only slab-sized, never (TK, TN).
        w = w_ref[pl.ds(start, kslab), :].astype(jnp.float32)
        xm = x_ref[0:1, pl.ds(start, kslab)]   # (1, kslab)
        xs = x_ref[1:2, pl.ds(start, kslab)]   # (1, kslab)
        acc_ref[0:1, :] += jnp.dot(xm, w, preferred_element_type=jnp.float32)
        acc_ref[1:2, :] += jnp.dot(xs, w * w, preferred_element_type=jnp.float32)
        return carry

    lax.fori_loop(0, nslabs, slab_body, 0, unroll=True)

    @pl.when(k == pl.num_programs(1) - 1)
    def _finalize():
        # Bias row 1 is zero, so the variance row is unaffected.
        o_ref[...] = acc_ref[...] + b_ref[...]


def npn_linear_lite(x_m, x_s, W_m, bias_m, *, weight_dtype=jnp.float32):
    """Pallas implementation of NPNLinearLite.forward with dual_input=True.

    x_m, x_s : (in_channels,) float32
    W_m      : (in_channels, out_channels) float32
    bias_m   : (out_channels,) float32
    returns  : (o_m, o_s), each (out_channels,) float32
    """
    in_channels, out_channels = W_m.shape
    w_itemsize = jnp.dtype(weight_dtype).itemsize

    vmem_cap, num_cores = _tpu_budget()

    # ---- tile sizing -------------------------------------------------------
    in_p0 = _round_up(in_channels, 128)
    out_p0 = _round_up(out_channels, 128)

    TK = min(in_p0, 1024)                       # multiple of 128
    KSLAB = 256 if TK % 256 == 0 else 128       # divides TK exactly
    in_p = _round_up(in_p0, TK)                 # exact K-tile multiple

    # VMEM budget for resident buffers (leave headroom for compiler scratch).
    budget = int(vmem_cap * 0.40)
    # Dominant per-TN residents: double-buffered W tiles + f32 upcast slab
    # + w^2 slab temp + small bias/out/acc terms.
    denom = 2 * TK * w_itemsize + 2 * KSLAB * 4 + 64
    tn_max = max(128, (budget // denom) // 128 * 128)

    TN = min(out_p0, tn_max)
    if num_cores >= 2 and out_p0 >= 256:
        # Guarantee >= 2 blocks on the "parallel" axis so both TensorCores
        # (and both halves of the chip's HBM bandwidth) are used on v7x.
        tn_core_cap = _round_up(-(-out_p0 // num_cores), 128)
        TN = min(TN, tn_core_cap)
    TN = max(128, (TN // 128) * 128)
    out_p = _round_up(out_p0, TN)               # exact N-tile multiple

    grid = (out_p // TN, in_p // TK)
    nslabs = TK // KSLAB

    # ---- padded / packed operands -----------------------------------------
    x2 = jnp.zeros((2, in_p), jnp.float32)
    x2 = x2.at[0, :in_channels].set(x_m.astype(jnp.float32))
    x2 = x2.at[1, :in_channels].set(x_s.astype(jnp.float32))
    w_p = (
        jnp.zeros((in_p, out_p), weight_dtype)
        .at[:in_channels, :out_channels]
        .set(W_m.astype(weight_dtype))
    )
    b2 = (
        jnp.zeros((2, out_p), jnp.float32)
        .at[0, :out_channels]
        .set(bias_m.astype(jnp.float32))
    )

    # ---- VMEM limit: account for w^2 slab temp + double-buffered tiles -----
    resident = (
        2 * TK * TN * w_itemsize     # double-buffered W tiles
        + 2 * KSLAB * TN * 4         # w^2 slab temp (+ f32 upcast copy)
        + 2 * 2 * TK * 4             # double-buffered packed-x tiles
        + 2 * 2 * TN * 4 * 2         # double-buffered bias + output tiles
        + 2 * TN * 4                 # (2, TN) accumulator scratch
    )
    vmem_limit = int(min(0.85 * vmem_cap, max(24 * _MIB, 2 * resident)))

    cost = pl.CostEstimate(
        flops=5 * in_p * out_p + 2 * out_p,
        transcendentals=0,
        bytes_accessed=in_p * out_p * w_itemsize + 2 * in_p * 4 + 4 * out_p * 4,
    )

    kernel = functools.partial(_npn_linear_lite_kernel, kslab=KSLAB, nslabs=nslabs)

    out = pl.pallas_call(
        kernel,
        out_shape=jax.ShapeDtypeStruct((2, out_p), jnp.float32),
        grid_spec=pltpu.PrefetchScalarGridSpec(
            num_scalar_prefetch=0,
            grid=grid,
            in_specs=[
                pl.BlockSpec((2, TK), lambda j, k: (0, k)),    # packed x_m/x_s
                pl.BlockSpec((TK, TN), lambda j, k: (k, j)),   # W (streamed)
                pl.BlockSpec((2, TN), lambda j, k: (0, j)),    # bias (row1 = 0)
            ],
            out_specs=pl.BlockSpec((2, TN), lambda j, k: (0, j)),
            scratch_shapes=[
                pltpu.VMEM((2, TN), jnp.float32),              # [o_m; o_s] acc
            ],
        ),
        compiler_params=pltpu.CompilerParams(
            dimension_semantics=("parallel", "arbitrary"),
            vmem_limit_bytes=vmem_limit,
        ),
        cost_estimate=cost,
    )(x2, w_p, b2)

    return out[0, :out_channels], out[1, :out_channels]


def _reference(x_m, x_s, W_m, bias_m):
    return x_m @ W_m + bias_m, x_s @ (W_m * W_m)


def _make_inputs(key, in_channels, out_channels):
    k_w, k_xm, k_xs = jax.random.split(key, 3)
    # Mirrors the PyTorch __init__: W_m = 2*sqrt(6)/sqrt(in+out) * (U[0,1) - 0.5)
    scale = 2.0 * math.sqrt(6.0) / math.sqrt(in_channels + out_channels)
    W_m = scale * (
        jax.random.uniform(k_w, (in_channels, out_channels), jnp.float32) - 0.5
    )
    bias_m = jnp.zeros((out_channels,), jnp.float32)
    x_m = jax.random.normal(k_xm, (in_channels,), jnp.float32)
    x_s = jnp.abs(jax.random.normal(k_xs, (in_channels,), jnp.float32))
    return x_m, x_s, W_m, bias_m


if __name__ == "__main__":
    key = jax.random.PRNGKey(0)
    k1, k2 = jax.random.split(key)

    # Case 1: aligned toy shapes (matches the original toy experiment scale).
    x_m, x_s, W_m, bias_m = _make_inputs(k1, 32, 32)
    o_m, o_s = npn_linear_lite(x_m, x_s, W_m, bias_m)
    jax.block_until_ready((o_m, o_s))
    ref_m, ref_s = _reference(x_m, x_s, W_m, bias_m)
    assert o_m.shape == (32,) and o_s.shape == (32,)
    assert jnp.allclose(o_m, ref_m, atol=1e-5, rtol=1e-5)
    assert jnp.allclose(o_s, ref_s, atol=1e-5, rtol=1e-5)

    # Case 2: unaligned shapes exercising padding, K-slab loop and multi-tile N.
    x_m, x_s, W_m, bias_m = _make_inputs(k2, 300, 200)
    o_m, o_s = npn_linear_lite(x_m, x_s, W_m, bias_m)
    jax.block_until_ready((o_m, o_s))
    ref_m, ref_s = _reference(x_m, x_s, W_m, bias_m)
    assert o_m.shape == (200,) and o_s.shape == (200,)
    assert jnp.allclose(o_m, ref_m, atol=1e-5, rtol=1e-5)
    assert jnp.allclose(o_s, ref_s, atol=1e-5, rtol=1e-5)

    print("KERNEL_OK")
</pallas_src>

<mosaic_0001>
module attributes {stable_mosaic.version = 11 : i64} {
  func.func @_npn_linear_lite_kernel(%arg0: i32, %arg1: i32, %arg2: memref<2x128xf32, #tpu.memory_space<vmem>>, %arg3: memref<128x128xf32, #tpu.memory_space<vmem>>, %arg4: memref<2x128xf32, #tpu.memory_space<vmem>>, %arg5: memref<2x128xf32, #tpu.memory_space<vmem>>, %arg6: memref<2x128xf32, #tpu.memory_space<vmem>>) attributes {dimension_semantics = [#tpu.dimension_semantics<parallel>, #tpu.dimension_semantics<arbitrary>], iteration_bounds = array<i64: 1, 1>, scalar_prefetch = 0 : i64, scratch_operands = 1 : i64, tpu.core_type = #tpu.core_type<tc>, window_params = [{transform_indices = @transform_0, window_bounds = array<i64: 2, 128>}, {transform_indices = @transform_1, window_bounds = array<i64: 128, 128>}, {transform_indices = @transform_2, window_bounds = array<i64: 2, 128>}, {transform_indices = @transform_3, window_bounds = array<i64: 2, 128>}]} {
    %c0_i32 = arith.constant 0 : i32
    %0 = arith.cmpi eq, %arg1, %c0_i32 : i32
    %1 = arith.extui %0 : i1 to i32
    %c0_i32_0 = arith.constant 0 : i32
    %2 = arith.cmpi ne, %1, %c0_i32_0 : i32
    scf.if %2 {
      %cst_14 = arith.constant 0.000000e+00 : f32
      %23 = vector.broadcast %cst_14 : f32 to vector<2x128xf32>
      %c0_15 = arith.constant 0 : index
      %c0_16 = arith.constant 0 : index
      %24 = vector.load %arg6[%c0_15, %c0_16] : memref<2x128xf32, #tpu.memory_space<vmem>>, vector<2x128xf32>
      tpu.vector_store %arg6[%c0_15, %c0_16], %23 {strides = array<i32>} : memref<2x128xf32, #tpu.memory_space<vmem>>, vector<2x128xf32>,
    } else {
    }
    %c0_i32_1 = arith.constant 0 : i32
    %c128_i32 = arith.constant 128 : i32
    %3 = arith.muli %c0_i32_1, %c128_i32 : i32
    %4 = tpu.assume_multiple %3, 128 : i32
    %5 = arith.index_cast %4 : i32 to index
    %c0 = arith.constant 0 : index
    %6 = vector.load %arg3[%5, %c0] : memref<128x128xf32, #tpu.memory_space<vmem>>, vector<128x128xf32>
    %c0_2 = arith.constant 0 : index
    %7 = arith.index_cast %4 : i32 to index
    %8 = vector.load %arg2[%c0_2, %7] : memref<2x128xf32, #tpu.memory_space<vmem>>, vector<1x128xf32>
    %c1 = arith.constant 1 : index
    %9 = arith.index_cast %4 : i32 to index
    %10 = vector.load %arg2[%c1, %9] : memref<2x128xf32, #tpu.memory_space<vmem>>, vector<1x128xf32>
    %c0_3 = arith.constant 0 : index
    %c0_4 = arith.constant 0 : index
    %11 = vector.load %arg6[%c0_3, %c0_4] : memref<2x128xf32, #tpu.memory_space<vmem>>, vector<1x128xf32>
    %cst = arith.constant dense<0.000000e+00> : vector<1x128xf32>
    %12 = tpu.matmul %8, %6, %cst {dimension_numbers = #tpu.dot_dimension_numbers<[1], [0], [0], [1], [0, 0, 1, 1], [], []>} : vector<1x128xf32>, vector<128x128xf32>, vector<1x128xf32> -> vector<1x128xf32>
    %13 = arith.addf %11, %12 : vector<1x128xf32>
    %c0_5 = arith.constant 0 : index
    %c0_6 = arith.constant 0 : index
    %14 = vector.load %arg6[%c0_5, %c0_6] : memref<2x128xf32, #tpu.memory_space<vmem>>, vector<1x128xf32>
    tpu.vector_store %arg6[%c0_5, %c0_6], %13 {strides = array<i32>} : memref<2x128xf32, #tpu.memory_space<vmem>>, vector<1x128xf32>,
    %c1_7 = arith.constant 1 : index
    %c0_8 = arith.constant 0 : index
    %15 = vector.load %arg6[%c1_7, %c0_8] : memref<2x128xf32, #tpu.memory_space<vmem>>, vector<1x128xf32>
    %16 = arith.mulf %6, %6 : vector<128x128xf32>
    %cst_9 = arith.constant dense<0.000000e+00> : vector<1x128xf32>
    %17 = tpu.matmul %10, %16, %cst_9 {dimension_numbers = #tpu.dot_dimension_numbers<[1], [0], [0], [1], [0, 0, 1, 1], [], []>} : vector<1x128xf32>, vector<128x128xf32>, vector<1x128xf32> -> vector<1x128xf32>
    %18 = arith.addf %15, %17 : vector<1x128xf32>
    %c1_10 = arith.constant 1 : index
    %c0_11 = arith.constant 0 : index
    %19 = vector.load %arg6[%c1_10, %c0_11] : memref<2x128xf32, #tpu.memory_space<vmem>>, vector<1x128xf32>
    tpu.vector_store %arg6[%c1_10, %c0_11], %18 {strides = array<i32>} : memref<2x128xf32, #tpu.memory_space<vmem>>, vector<1x128xf32>,
    %c1_i32 = arith.constant 1 : i32
    %c0_i32_12 = arith.constant 0 : i32
    %20 = arith.cmpi eq, %arg1, %c0_i32_12 : i32
    %21 = arith.extui %20 : i1 to i32
    %c0_i32_13 = arith.constant 0 : i32
    %22 = arith.cmpi ne, %21, %c0_i32_13 : i32
    scf.if %22 {
      %c0_14 = arith.constant 0 : index
      %c0_15 = arith.constant 0 : index
      %23 = vector.load %arg6[%c0_14, %c0_15] : memref<2x128xf32, #tpu.memory_space<vmem>>, vector<2x128xf32>
      %c0_16 = arith.constant 0 : index
      %c0_17 = arith.constant 0 : index
      %24 = vector.load %arg4[%c0_16, %c0_17] : memref<2x128xf32, #tpu.memory_space<vmem>>, vector<2x128xf32>
      %25 = arith.addf %23, %24 : vector<2x128xf32>
      %c0_18 = arith.constant 0 : index
      %c0_19 = arith.constant 0 : index
      %26 = vector.load %arg5[%c0_18, %c0_19] : memref<2x128xf32, #tpu.memory_space<vmem>>, vector<2x128xf32>
      tpu.vector_store %arg5[%c0_18, %c0_19], %25 {strides = array<i32>} : memref<2x128xf32, #tpu.memory_space<vmem>>, vector<2x128xf32>,
    } else {
    }
    return
  }
  func.func @transform_0(%arg0: i32, %arg1: i32) -> (i32, i32) {
    %c0_i32 = arith.constant 0 : i32
    %c0_i32_0 = arith.constant 0 : i32
    return %c0_i32, %arg1 : i32, i32
  }
  func.func @transform_1(%arg0: i32, %arg1: i32) -> (i32, i32) {
    %c0_i32 = arith.constant 0 : i32
    return %arg1, %arg0 : i32, i32
  }
  func.func @transform_2(%arg0: i32, %arg1: i32) -> (i32, i32) {
    %c0_i32 = arith.constant 0 : i32
    %c0_i32_0 = arith.constant 0 : i32
    return %c0_i32, %arg0 : i32, i32
  }
  func.func @transform_3(%arg0: i32, %arg1: i32) -> (i32, i32) {
    %c0_i32 = arith.constant 0 : i32
    %c0_i32_0 = arith.constant 0 : i32
    return %c0_i32, %arg0 : i32, i32
  }
}

</mosaic_0001>

<bundles_post_ra>
// kernel: tpu_custom_call.1
= control target key start
LH: loop header
LB: loop body
LE: loop exit
PB: predicated region body
PF: predicated region fallthrough
CT: control target
= control target key end

     0   :  { %8 = vsyncpa [#allocation4], 0  ;;  %s571_s0 = inlined_call_operand.hbm [shape: f32[2,128], index: 0, kind: input, shape index: {}]   ;;  %s572_s1 = inlined_call_operand.hbm [shape: f32[128,128], index: 1, kind: input, shape index: {}]   ;;  %s573_s2 = inlined_call_operand.vmem [shape: f32[2,128], index: 2, kind: input, shape index: {}]   ;;  %s574_s3 = inlined_call_operand.hbm [shape: f32[2,128], index: 3, kind: output, shape index: {}]  }
   0x1   :  { %9 = vsyncpa [#allocation7], 0 }
   0x2   :  { %10 = vsyncpa [#allocation5], 0  ;;  %s481_s12 = smov [#allocation3]   ;;  %s482_s14 = smov [#allocation6]  }
   0x3   :  { %s17_s13 = sshll.u32 %s481_s12, 4  ;;  %s26_s15 = sshll.u32 %s482_s14, 4  ;;  %s18_s13 = int_to_ptr.vmem [resolvable:$true] %s17_s13  ;;  %s509_s15 = int_to_ptr.vmem [resolvable:$true] %s26_s15 }
   0x4   :  { %s409_s18 = scalar_lea.hbm %s571_s0, 32 }
   0x5   :  { %p410_p0 = scmp.ne.s32.totalorder %s571_s0, %s409_s18  ;;  %p413_p1 = scmp.lt.u32.totalorder %s409_s18, %s571_s0 }
   0x7   :  { %p415_p2 = pnand %p413_p1, %p410_p0 }
   0x9   :  { %418 = shalt.err (!%p415_p2)
}
   0xa   :  { %s419_s23 = scalar_lea.vmem %s18_s13, 32  ;;  %p424_p4 = scmp.lt.s32.totalorder %s18_s13, %s18_s13 }
   0xb   :  { %p420_p3 = scmp.ne.s32.totalorder %s18_s13, %s419_s23  ;;  %p425_p5 = scmp.lt.s32.totalorder %s419_s23, %s419_s23 }
   0xd   :  { %p426_p6 = por %p425_p5, %p424_p4 }
   0xf   :  { %p427_p7 = pnand %p426_p6, %p420_p3 }
  0x11   :  { %430 = shalt.err (!%p427_p7)
}
  0x12   :  { %20 = dma.hbm_to_vmem [thread:$0]  %s571_s0, 32, %s18_s13, [#allocation4]  }
  0x13   :  { %s431_s28 = scalar_lea.hbm %s572_s1, 2048 }
  0x14   :  { %p432_p8 = scmp.ne.s32.totalorder %s572_s1, %s431_s28  ;;  %p435_p9 = scmp.lt.u32.totalorder %s431_s28, %s572_s1 }
  0x16   :  { %p437_p10 = pnand %p435_p9, %p432_p8 }
  0x18   :  { %440 = shalt.err (!%p437_p10)
}
  0x19   :  { %s441_s6 = scalar_lea.vmem %s509_s15, 2048  ;;  %p446_p12 = scmp.lt.s32.totalorder %s509_s15, %s509_s15 }
  0x1a   :  { %p442_p11 = scmp.ne.s32.totalorder %s509_s15, %s441_s6  ;;  %p447_p13 = scmp.lt.s32.totalorder %s441_s6, %s441_s6 }
  0x1c   :  { %p448_p0 = por %p447_p13, %p446_p12 }
  0x1e   :  { %p449_p1 = pnand %p448_p0, %p442_p11 }
  0x20   :  { %452 = shalt.err (!%p449_p1)
}
  0x21   :  { %s483_s0 = smov 128   ;;  %s484_s7 = smov 8  }
  0x22   :  { %32 = dma.hbm_to_vmem [thread:$0]  %s572_s1, 2048, %s509_s15, [#allocation7], %s483_s0, %s483_s0, %s484_s7  }
  0x23   :  { %475 = dma.done.wait [#allocation4], 32  }
  0x24   :  { %476 = vsyncadd [#allocation4], 4294967264 }
  0x25   :  { %477 = dma.done.wait [#allocation7], 2048  }
  0x26   :  { %478 = vsyncadd [#allocation7], 4294965248  ;;  %v485_v0 = vmov 0.0|0.0   ;;  %v486_v1 = vmov 0.0   ;;  %vm487_vm0 = vmmov 0   ;;  %v46_v2 = vld [vmem:[#allocation6] sm:$0xff] }
  0x27   :  { %353 = vmatprep.subr.bf16.mxu0 %v485_v0  ;;  %377 = vmatprep.subr.bf16.mxu1 %v485_v0  ;;  %45 = vst [vmem:[#allocation2] sm:$0x3] %v486_v1  ;;  %v47_v3 = vld [vmem:[#allocation6 + $0x8] sm:$0xff]  ;;  %v48_v4 = vld [vmem:[#allocation6 + $0x10] sm:$0xff]  ;;  %v138_v6 = vmul.f32 %v46_v2, %v46_v2  ;;  %v49_v8 = vld [vmem:[#allocation6 + $0x18] sm:$0xff]  ;;  %s488_s11 = smov [#allocation8]  }
  0x28   :  { %315 = vmatprep.mubr.msk.f32.mxu0 %vm487_vm0, %v486_v1  ;;  %350 = vmatprep.mubr.msk.f32.mxu1 %vm487_vm0, %v486_v1  ;;  %v354_v5 = vpack.c.bf16 %v47_v3, %v46_v2  ;;  %v139_v7 = vmul.f32 %v47_v3, %v47_v3  ;;  %v140_v9 = vmul.f32 %v48_v4, %v48_v4  ;;  %v50_v11 = vld [vmem:[#allocation6 + $0x20] sm:$0xff]  ;;  %v51_v12 = vld [vmem:[#allocation6 + $0x28] sm:$0xff]  ;;  %v52_v18 = vld [vmem:[#allocation6 + $0x30] sm:$0xff]  ;;  %s239_s12 = sshll.u32 %s488_s11, 4  ;;  %s240_s12 = int_to_ptr.vmem [resolvable:$true] %s239_s12 }
  0x29   :  { %v141_v10 = vmul.f32 %v49_v8, %v49_v8  ;;  %v357_v14 = vpack.c.bf16 %v49_v8, %v48_v4  ;;  %v142_v16 = vmul.f32 %v50_v11, %v50_v11  ;;  %v143_v17 = vmul.f32 %v51_v12, %v51_v12  ;;  %v53_v19 = vld [vmem:[#allocation6 + $0x38] sm:$0xff]  ;;  %v54_v24 = vld [vmem:[#allocation6 + $0x40] sm:$0xff]  ;;  %v55_v25 = vld [vmem:[#allocation6 + $0x48] sm:$0xff]  ;;  %s453_s13 = scalar_lea.vmem %s240_s12, 32  ;;  %p458_p3 = scmp.lt.s32.totalorder %s240_s12, %s240_s12 }
  0x2a   :  { %355 = vmatpush3.bf16.msra.mxu0 %v354_v5  ;;  %v378_v13 = vpack.c.bf16 %v139_v7, %v138_v6  ;;  %v360_v20 = vpack.c.bf16 %v51_v12, %v50_v11  ;;  %v144_v22 = vmul.f32 %v52_v18, %v52_v18  ;;  %v145_v23 = vmul.f32 %v53_v19, %v53_v19  ;;  %v56_v30 = vld [vmem:[#allocation6 + $0x50] sm:$0xff]  ;;  %v57_v31 = vld [vmem:[#allocation6 + $0x58] sm:$0xff]  ;;  %v58_v36 = vld [vmem:[#allocation6 + $0x60] sm:$0xff]  ;;  %p454_p2 = scmp.ne.s32.totalorder %s240_s12, %s453_s13  ;;  %p459_p4 = scmp.lt.s32.totalorder %s453_s13, %s453_s13 }
  0x2b   :  { %356 = vmatprep.subr.bf16.mxu0 %v485_v0  ;;  %v381_v15 = vpack.c.bf16 %v141_v10, %v140_v9  ;;  %v384_v21 = vpack.c.bf16 %v143_v17, %v142_v16  ;;  %v363_v26 = vpack.c.bf16 %v53_v19, %v52_v18  ;;  %v146_v28 = vmul.f32 %v54_v24, %v54_v24  ;;  %v59_v37 = vld [vmem:[#allocation6 + $0x68] sm:$0xff]  ;;  %v60_v42 = vld [vmem:[#allocation6 + $0x70] sm:$0xff]  ;;  %v61_v43 = vld [vmem:[#allocation6 + $0x78] sm:$0xff] }
  0x2c   :  { %379 = vmatpush3.bf16.msra.mxu1 %v378_v13  ;;  %v387_v27 = vpack.c.bf16 %v145_v23, %v144_v22  ;;  %v147_v29 = vmul.f32 %v55_v25, %v55_v25  ;;  %v366_v32 = vpack.c.bf16 %v55_v25, %v54_v24  ;;  %v148_v34 = vmul.f32 %v56_v30, %v56_v30  ;;  %v62_v50 = vld [vmem:[#allocation3] sm:$0x1]  ;;  %v63_v51 = vld [vmem:[#allocation3 + $0x1] sm:$0x1]  ;;  %v230_v60 = vld [vmem:[%s573_s2] sm:$0x3]  ;;  %p460_p5 = por %p459_p4, %p458_p3 }
  0x2d   :  { %380 = vmatprep.subr.bf16.mxu1 %v485_v0  ;;  %v149_v35 = vmul.f32 %v57_v31, %v57_v31  ;;  %v369_v38 = vpack.c.bf16 %v57_v31, %v56_v30  ;;  %v150_v40 = vmul.f32 %v58_v36, %v58_v36  ;;  %v151_v41 = vmul.f32 %v59_v37, %v59_v37 }
  0x2e   :  { %358 = vmatpush3.bf16.msra.mxu0 %v357_v14  ;;  %v390_v33 = vpack.c.bf16 %v147_v29, %v146_v28  ;;  %v372_v44 = vpack.c.bf16 %v59_v37, %v58_v36  ;;  %v152_v46 = vmul.f32 %v60_v42, %v60_v42  ;;  %v153_v47 = vmul.f32 %v61_v43, %v61_v43  ;;  %v64_v52 = vld [vmem:[#allocation2] sm:$0x1]  ;;  %v137_v54 = vld [vmem:[#allocation2 + $0x1] sm:$0x1]  ;;  %p461_p6 = pnand %p460_p5, %p454_p2 }
  0x2f   :  { %359 = vmatprep.subr.bf16.mxu0 %v485_v0  ;;  %v393_v39 = vpack.c.bf16 %v149_v35, %v148_v34  ;;  %v396_v45 = vpack.c.bf16 %v151_v41, %v150_v40  ;;  %v375_v48 = vpack.c.bf16 %v61_v43, %v60_v42 }
  0x30   :  { %382 = vmatpush3.bf16.msra.mxu1 %v381_v15  ;;  %v399_v49 = vpack.c.bf16 %v153_v47, %v152_v46 }
  0x31   :  { %383 = vmatprep.subr.bf16.mxu1 %v485_v0 }
  0x32   :  { %361 = vmatpush3.bf16.msra.mxu0 %v360_v20 }
  0x33   :  { %362 = vmatprep.subr.bf16.mxu0 %v485_v0 }
  0x34   :  { %385 = vmatpush3.bf16.msra.mxu1 %v384_v21 }
  0x35   :  { %386 = vmatprep.subr.bf16.mxu1 %v485_v0 }
  0x36   :  { %364 = vmatpush3.bf16.msra.mxu0 %v363_v26 }
  0x37   :  { %365 = vmatprep.subr.bf16.mxu0 %v485_v0 }
  0x38   :  { %388 = vmatpush3.bf16.msra.mxu1 %v387_v27 }
  0x39   :  { %389 = vmatprep.subr.bf16.mxu1 %v485_v0 }
  0x3a   :  { %367 = vmatpush3.bf16.msra.mxu0 %v366_v32 }
  0x3b   :  { %368 = vmatprep.subr.bf16.mxu0 %v485_v0 }
  0x3c   :  { %391 = vmatpush3.bf16.msra.mxu1 %v390_v33 }
  0x3d   :  { %392 = vmatprep.subr.bf16.mxu1 %v485_v0 }
  0x3e   :  { %370 = vmatpush3.bf16.msra.mxu0 %v369_v38 }
  0x3f   :  { %371 = vmatprep.subr.bf16.mxu0 %v485_v0 }
  0x40   :  { %394 = vmatpush3.bf16.msra.mxu1 %v393_v39 }
  0x41   :  { %395 = vmatprep.subr.bf16.mxu1 %v485_v0 }
  0x42   :  { %373 = vmatpush3.bf16.msra.mxu0 %v372_v44 }
  0x43   :  { %374 = vmatprep.subr.bf16.mxu0 %v485_v0 }
  0x44   :  { %397 = vmatpush3.bf16.msra.mxu1 %v396_v45 }
  0x45   :  { %398 = vmatprep.subr.bf16.mxu1 %v485_v0 }
  0x46   :  { %376 = vmatpush3.bf16.msra.mxu0 %v375_v48 }
  0x48   :  { %400 = vmatpush3.bf16.msra.mxu1 %v399_v49 }
  0x49   :  { %316 = vmatmul.mubr.f32.vlgmr.msra.gmra.mrb[0].mxu0 %v62_v50 }
  0x4b   :  { %351 = vmatmul.mubr.f32.vlgmr.msra.gmra.mrb[0].mxu1 %v63_v51 }
 0x11c   :  { %v131_v53 = vpop.f32.mrb[0].mxu0 }
 0x11d   :  { %v135_v55 = vadd.f32 %v131_v53, %v64_v52  ;;  %v317_v56 = vpop.f32.mrb[1].mxu0 }
 0x11e   :  { %v220_v57 = vpop.f32.mrb[0].mxu1 }
 0x11f   :  { %136 = vst [vmem:[#allocation2] sm:$0x1] %v135_v55  ;;  %v224_v58 = vadd.f32 %v220_v57, %v137_v54  ;;  %v352_v59 = vpop.f32.mrb[1].mxu1 }
 0x121   :  { %225 = vst [vmem:[#allocation2 + $0x1] sm:$0x1] %v224_v58 }
 0x128   :  { %v229_v61 = vld [vmem:[#allocation2] sm:$0x3] }
 0x129   :  { %v231_v62 = vadd.f32 %v230_v60, %v229_v61 }
 0x12b   :  { %232 = vst [vmem:[#allocation8] sm:$0x3] %v231_v62 }
 0x12c   :  { %464 = shalt.err (!%p461_p6)
}
 0x12d   :  { %s465_s16 = scalar_lea.hbm %s574_s3, 32 }
 0x12e   :  { %p466_p7 = scmp.ne.s32.totalorder %s574_s3, %s465_s16  ;;  %p469_p8 = scmp.lt.u32.totalorder %s465_s16, %s574_s3 }
 0x130   :  { %p471_p9 = pnand %p469_p8, %p466_p7 }
 0x132   :  { %474 = shalt.err (!%p471_p9)
}
 0x133   :  { %242 = dma.vmem_to_hbm [thread:$0]  %s240_s12, 32, %s574_s3, [#allocation5]  }
 0x134   :  { %479 = dma.done.wait [#allocation5], 32  }
 0x135   :  { %480 = vsyncadd [#allocation5], 4294967264 }
 0x136   :  { %246 = vsyncpa [#allocation4], 1 }
 0x137   :  { %247 = vsyncpa [#allocation7], 1 }
 0x138   :  { %248 = vsyncpa [#allocation5], 1 }

</bundles_post_ra>
